<compile_context>
chip_gen: v6e
topology: v6e:2x2x1
jax: 0.10.0
libtpu: 0.0.40
codegen_flags: <defaults>
</compile_context>

<pallas_src>
import functools
import math

import jax
import jax.numpy as jnp
from jax.experimental import pallas as pl
from jax.experimental.pallas import tpu as pltpu


# ---------------- Gaussian taps (Python floats, baked into the kernel) ----------------
def _gaussian_taps(kernel_size: int, sigma: float):
    """1D Gaussian taps, normalized to sum to 1 (matches torchvision's kernel1d)."""
    half = (kernel_size - 1) * 0.5
    xs = [(-half + i) for i in range(kernel_size)]          # linspace(-half, half, K)
    pdf = [math.exp(-0.5 * (x / sigma) ** 2) for x in xs]
    s = sum(pdf)
    return tuple(p / s for p in pdf)


def _vmem_capacity_bytes() -> int:
    """Per-core VMEM capacity; conservative (v7x) fallback if the query fails."""
    try:
        cap = int(pltpu.get_tpu_info().vmem_capacity_bytes)
        if cap > 0:
            return cap
    except Exception:
        pass
    return 64 * 1024 * 1024


# ---------------- Pallas kernel: separable depthwise Gaussian blur ----------------
def _blur_kernel(x_ref, o_ref, *, taps, out_is_int):
    # x_ref: (Cb, H, W) VMEM, original dtype.   o_ref: (Cb, H, W) VMEM, original dtype.
    K = len(taps)
    pad = K // 2
    _, H, W = o_ref.shape

    # Load once, cast to f32 in-kernel (dtype conversion fused into the kernel).
    x = x_ref[...].astype(jnp.float32)                        # (Cb, H, W)

    # ---- vertical K-tap pass with reflect halo rows built as values ----
    if pad > 0:
        top = [x[:, i:i + 1, :] for i in range(pad, 0, -1)]          # rows pad .. 1
        bot = [x[:, H - 2 - i:H - 1 - i, :] for i in range(pad)]     # rows H-2 .. H-1-pad
        xp = jnp.concatenate(top + [x] + bot, axis=1)                # (Cb, H+2p, W)
    else:
        xp = x
    acc = xp[:, 0:H, :] * taps[0]
    for t in range(1, K):
        acc = acc + xp[:, t:t + H, :] * taps[t]

    # ---- horizontal K-tap pass with reflect halo columns built as values ----
    if pad > 0:
        left = [acc[:, :, i:i + 1] for i in range(pad, 0, -1)]       # cols pad .. 1
        right = [acc[:, :, W - 2 - i:W - 1 - i] for i in range(pad)]  # cols W-2 .. W-1-pad
        accp = jnp.concatenate(left + [acc] + right, axis=2)         # (Cb, H, W+2p)
    else:
        accp = acc
    out = accp[:, :, 0:W] * taps[0]
    for t in range(1, K):
        out = out + accp[:, :, t:t + W] * taps[t]

    # Round-and-cast fused into the final store (torchvision semantics for int dtypes).
    if out_is_int:
        out = jnp.round(out)
    o_ref[...] = out.astype(o_ref.dtype)


def gaussian_blur_pallas(img: jnp.ndarray, kernel_size: int, sigma: float) -> jnp.ndarray:
    """img: (N, C, H, W) or (C, H, W). Gaussian blur, reflect padding, per-channel."""
    orig_dtype = img.dtype
    need_squeeze = False
    if img.ndim == 3:
        img = img[None]
        need_squeeze = True
    assert img.ndim == 4, "expected NCHW (or CHW) input"

    N, C, H, W = img.shape
    K = int(kernel_size)
    if K <= 0 or K % 2 == 0:
        raise ValueError("kernel_size must be a positive odd integer")
    pad = K // 2
    if pad >= H or pad >= W:
        raise ValueError("reflect padding requires kernel_size // 2 < H and < W")

    taps = _gaussian_taps(K, float(sigma))
    out_is_int = bool(jnp.issubdtype(orig_dtype, jnp.integer))

    # Collapse N and C into one "plane" axis; each plane is blurred independently.
    # Input stays in its original dtype (no wrapper-side astype pass).
    NC = N * C
    x = img.reshape(NC, H, W)

    # ---- generation-aware block sizing ----
    vmem_cap = _vmem_capacity_bytes()
    # Scoped VMEM limit: ~48 MiB on v7x (64 MiB physical), ~96 MiB on v5e/v6e (128 MiB).
    vmem_limit = max(32 * 1024 * 1024,
                     min(vmem_cap * 3 // 4, vmem_cap - 2 * 1024 * 1024))
    block_budget = vmem_cap // 2

    item_bytes = jnp.dtype(orig_dtype).itemsize
    # Per channel-plane: double-buffered input + output blocks (original dtype) plus a
    # conservative allowance for the f32 working values (padded input, vertical acc,
    # padded acc, output, loaded block) which the compiler keeps in vregs / spills.
    per_chan_bytes = (4 * H * W * item_bytes
                      + 5 * 4 * (H + 2 * pad) * (W + 2 * pad))
    cb = max(1, min(NC, block_budget // max(per_chan_bytes, 1)))

    # Keep >= min(NC, 4) near-equal grid steps: both v7x TensorCores stay busy and the
    # first input DMA / last writeback overlap with compute.
    min_steps = min(NC, 4)
    num_blocks = max(pl.cdiv(NC, cb), min_steps)
    cb = pl.cdiv(NC, num_blocks)
    num_blocks = pl.cdiv(NC, cb)

    # NOTE: for best store throughput keep W a multiple of 128 (lane-dense output
    # stores); small W (like the 16x16 test) only uses part of each vreg.

    out = pl.pallas_call(
        functools.partial(_blur_kernel, taps=taps, out_is_int=out_is_int),
        out_shape=jax.ShapeDtypeStruct((NC, H, W), orig_dtype),
        grid=(num_blocks,),
        in_specs=[pl.BlockSpec((cb, H, W), lambda i: (i, 0, 0))],
        out_specs=pl.BlockSpec((cb, H, W), lambda i: (i, 0, 0)),
        compiler_params=pltpu.CompilerParams(
            dimension_semantics=("parallel",),
            vmem_limit_bytes=int(vmem_limit),
        ),
    )(x)

    out = out.reshape(N, C, H, W)
    if need_squeeze:
        out = out[0]
    return out


# ---------------- Module-equivalent wrapper ----------------
class GaussianBlurPallas:
    def __init__(self, kernel_size: int, sigma=(0.1, 2.0)):
        self.kernel_size = int(kernel_size)
        self.sigma = sigma

    def __call__(self, img: jnp.ndarray, key: jax.Array) -> jnp.ndarray:
        # Stand-in for torch.empty(1).uniform_(sigma_min, sigma_max).item().
        # NOTE: concrete host-side draw; do not call this wrapper under jit/vmap.
        sigma = float(jax.random.uniform(key, (), minval=self.sigma[0],
                                         maxval=self.sigma[1]))
        return gaussian_blur_pallas(img, self.kernel_size, sigma)


# ---------------- Reference (plain JAX, exact f32, non-separable) ----------------
def _reference_blur(img, kernel_size, sigma):
    K = int(kernel_size)
    pad = K // 2
    t = jnp.asarray(_gaussian_taps(K, float(sigma)), jnp.float32)
    k2d = jnp.outer(t, t)                                    # (K, K)
    x = img.astype(jnp.float32)
    xp = jnp.pad(x, ((0, 0), (0, 0), (pad, pad), (pad, pad)), mode="reflect")
    H, W = x.shape[-2], x.shape[-1]
    out = jnp.zeros_like(x)
    for i in range(K):
        for j in range(K):
            out = out + k2d[i, j] * xp[..., i:i + H, j:j + W]
    return out


if __name__ == "__main__":
    key = jax.random.PRNGKey(0)
    k_img, k_sigma = jax.random.split(key)

    N, C, H, W = 2, 4, 16, 16
    kernel_size = 5
    x = jax.random.uniform(k_img, (N, C, H, W), dtype=jnp.float32)

    blur = GaussianBlurPallas(kernel_size, sigma=(0.1, 2.0))
    y = jax.block_until_ready(blur(x, k_sigma))

    # sanity check against plain-JAX (non-separable, exact f32) reference, same sigma draw
    sigma_val = float(jax.random.uniform(k_sigma, (), minval=0.1, maxval=2.0))
    y_ref = _reference_blur(x, kernel_size, sigma_val)
    assert y.shape == (N, C, H, W)
    err = float(jnp.max(jnp.abs(y.astype(jnp.float32) - y_ref)))
    assert err < 1e-4, err

    print("KERNEL_OK")
</pallas_src>

<mosaic_0001>
module attributes {stable_mosaic.version = 11 : i64} {
  func.func @_blur_kernel(%arg0: i32, %arg1: memref<2x16x16xf32, #tpu.memory_space<vmem>>, %arg2: memref<2x16x16xf32, #tpu.memory_space<vmem>>) attributes {dimension_semantics = [#tpu.dimension_semantics<parallel>], iteration_bounds = array<i64: 4>, scalar_prefetch = 0 : i64, scratch_operands = 0 : i64, tpu.core_type = #tpu.core_type<tc>, window_params = [{transform_indices = @transform_0, window_bounds = array<i64: 2, 16, 16>}, {transform_indices = @transform_1, window_bounds = array<i64: 2, 16, 16>}]} {
    %c0 = arith.constant 0 : index
    %c0_0 = arith.constant 0 : index
    %c0_1 = arith.constant 0 : index
    %0 = vector.load %arg1[%c0, %c0_0, %c0_1] : memref<2x16x16xf32, #tpu.memory_space<vmem>>, vector<2x16x16xf32>
    %1 = vector.extract_strided_slice %0 {offsets = [0, 2, 0], sizes = [2, 1, 16], strides = [1, 1, 1]} : vector<2x16x16xf32> to vector<2x1x16xf32>
    %2 = vector.extract_strided_slice %0 {offsets = [0, 1, 0], sizes = [2, 1, 16], strides = [1, 1, 1]} : vector<2x16x16xf32> to vector<2x1x16xf32>
    %3 = vector.extract_strided_slice %0 {offsets = [0, 14, 0], sizes = [2, 1, 16], strides = [1, 1, 1]} : vector<2x16x16xf32> to vector<2x1x16xf32>
    %4 = vector.extract_strided_slice %0 {offsets = [0, 13, 0], sizes = [2, 1, 16], strides = [1, 1, 1]} : vector<2x16x16xf32> to vector<2x1x16xf32>
    %5 = tpu.concatenate %1, %2, %0, %3, %4 in 1 : vector<2x1x16xf32>, vector<2x1x16xf32>, vector<2x16x16xf32>, vector<2x1x16xf32>, vector<2x1x16xf32> -> vector<2x20x16xf32>
    %6 = vector.extract_strided_slice %5 {offsets = [0, 0, 0], sizes = [2, 16, 16], strides = [1, 1, 1]} : vector<2x20x16xf32> to vector<2x16x16xf32>
    %cst = arith.constant 0.000000e+00 : f32
    %7 = vector.broadcast %cst : f32 to vector<2x16x16xf32>
    %8 = arith.mulf %6, %7 : vector<2x16x16xf32>
    %9 = vector.extract_strided_slice %5 {offsets = [0, 1, 0], sizes = [2, 16, 16], strides = [1, 1, 1]} : vector<2x20x16xf32> to vector<2x16x16xf32>
    %cst_2 = arith.constant 1.77663506E-17 : f32
    %10 = vector.broadcast %cst_2 : f32 to vector<2x16x16xf32>
    %11 = arith.mulf %9, %10 : vector<2x16x16xf32>
    %12 = arith.addf %8, %11 : vector<2x16x16xf32>
    %13 = vector.extract_strided_slice %5 {offsets = [0, 2, 0], sizes = [2, 16, 16], strides = [1, 1, 1]} : vector<2x20x16xf32> to vector<2x16x16xf32>
    %cst_3 = arith.constant 1.000000e+00 : f32
    %14 = vector.broadcast %cst_3 : f32 to vector<2x16x16xf32>
    %15 = arith.mulf %13, %14 : vector<2x16x16xf32>
    %16 = arith.addf %12, %15 : vector<2x16x16xf32>
    %17 = vector.extract_strided_slice %5 {offsets = [0, 3, 0], sizes = [2, 16, 16], strides = [1, 1, 1]} : vector<2x20x16xf32> to vector<2x16x16xf32>
    %cst_4 = arith.constant 1.77663506E-17 : f32
    %18 = vector.broadcast %cst_4 : f32 to vector<2x16x16xf32>
    %19 = arith.mulf %17, %18 : vector<2x16x16xf32>
    %20 = arith.addf %16, %19 : vector<2x16x16xf32>
    %21 = vector.extract_strided_slice %5 {offsets = [0, 4, 0], sizes = [2, 16, 16], strides = [1, 1, 1]} : vector<2x20x16xf32> to vector<2x16x16xf32>
    %cst_5 = arith.constant 0.000000e+00 : f32
    %22 = vector.broadcast %cst_5 : f32 to vector<2x16x16xf32>
    %23 = arith.mulf %21, %22 : vector<2x16x16xf32>
    %24 = arith.addf %20, %23 : vector<2x16x16xf32>
    %25 = vector.extract_strided_slice %24 {offsets = [0, 0, 2], sizes = [2, 16, 1], strides = [1, 1, 1]} : vector<2x16x16xf32> to vector<2x16x1xf32>
    %26 = vector.extract_strided_slice %24 {offsets = [0, 0, 1], sizes = [2, 16, 1], strides = [1, 1, 1]} : vector<2x16x16xf32> to vector<2x16x1xf32>
    %27 = vector.extract_strided_slice %24 {offsets = [0, 0, 14], sizes = [2, 16, 1], strides = [1, 1, 1]} : vector<2x16x16xf32> to vector<2x16x1xf32>
    %28 = vector.extract_strided_slice %24 {offsets = [0, 0, 13], sizes = [2, 16, 1], strides = [1, 1, 1]} : vector<2x16x16xf32> to vector<2x16x1xf32>
    %29 = tpu.concatenate %25, %26, %24, %27, %28 in 2 : vector<2x16x1xf32>, vector<2x16x1xf32>, vector<2x16x16xf32>, vector<2x16x1xf32>, vector<2x16x1xf32> -> vector<2x16x20xf32>
    %30 = vector.extract_strided_slice %29 {offsets = [0, 0, 0], sizes = [2, 16, 16], strides = [1, 1, 1]} : vector<2x16x20xf32> to vector<2x16x16xf32>
    %cst_6 = arith.constant 0.000000e+00 : f32
    %31 = vector.broadcast %cst_6 : f32 to vector<2x16x16xf32>
    %32 = arith.mulf %30, %31 : vector<2x16x16xf32>
    %33 = vector.extract_strided_slice %29 {offsets = [0, 0, 1], sizes = [2, 16, 16], strides = [1, 1, 1]} : vector<2x16x20xf32> to vector<2x16x16xf32>
    %cst_7 = arith.constant 1.77663506E-17 : f32
    %34 = vector.broadcast %cst_7 : f32 to vector<2x16x16xf32>
    %35 = arith.mulf %33, %34 : vector<2x16x16xf32>
    %36 = arith.addf %32, %35 : vector<2x16x16xf32>
    %37 = vector.extract_strided_slice %29 {offsets = [0, 0, 2], sizes = [2, 16, 16], strides = [1, 1, 1]} : vector<2x16x20xf32> to vector<2x16x16xf32>
    %cst_8 = arith.constant 1.000000e+00 : f32
    %38 = vector.broadcast %cst_8 : f32 to vector<2x16x16xf32>
    %39 = arith.mulf %37, %38 : vector<2x16x16xf32>
    %40 = arith.addf %36, %39 : vector<2x16x16xf32>
    %41 = vector.extract_strided_slice %29 {offsets = [0, 0, 3], sizes = [2, 16, 16], strides = [1, 1, 1]} : vector<2x16x20xf32> to vector<2x16x16xf32>
    %cst_9 = arith.constant 1.77663506E-17 : f32
    %42 = vector.broadcast %cst_9 : f32 to vector<2x16x16xf32>
    %43 = arith.mulf %41, %42 : vector<2x16x16xf32>
    %44 = arith.addf %40, %43 : vector<2x16x16xf32>
    %45 = vector.extract_strided_slice %29 {offsets = [0, 0, 4], sizes = [2, 16, 16], strides = [1, 1, 1]} : vector<2x16x20xf32> to vector<2x16x16xf32>
    %cst_10 = arith.constant 0.000000e+00 : f32
    %46 = vector.broadcast %cst_10 : f32 to vector<2x16x16xf32>
    %47 = arith.mulf %45, %46 : vector<2x16x16xf32>
    %48 = arith.addf %44, %47 : vector<2x16x16xf32>
    %c0_11 = arith.constant 0 : index
    %c0_12 = arith.constant 0 : index
    %c0_13 = arith.constant 0 : index
    %49 = vector.load %arg2[%c0_11, %c0_12, %c0_13] : memref<2x16x16xf32, #tpu.memory_space<vmem>>, vector<2x16x16xf32>
    tpu.vector_store %arg2[%c0_11, %c0_12, %c0_13], %48 {strides = array<i32>} : memref<2x16x16xf32, #tpu.memory_space<vmem>>, vector<2x16x16xf32>,
    return
  }
  func.func @transform_0(%arg0: i32) -> (i32, i32, i32) {
    %c0_i32 = arith.constant 0 : i32
    %c0_i32_0 = arith.constant 0 : i32
    %c0_i32_1 = arith.constant 0 : i32
    return %arg0, %c0_i32, %c0_i32_0 : i32, i32, i32
  }
  func.func @transform_1(%arg0: i32) -> (i32, i32, i32) {
    %c0_i32 = arith.constant 0 : i32
    %c0_i32_0 = arith.constant 0 : i32
    %c0_i32_1 = arith.constant 0 : i32
    return %arg0, %c0_i32, %c0_i32_0 : i32, i32, i32
  }
}

</mosaic_0001>

<bundles_post_ra>
// kernel: tpu_custom_call.1
= control target key start
LH: loop header
LB: loop body
LE: loop exit
PB: predicated region body
PF: predicated region fallthrough
CT: control target
= control target key end

     0   :  { %6 = vsyncpa [#allocation3], 0  ;;  %s963_s0 = inlined_call_operand.hbm [shape: f32[8,16,16], index: 0, kind: input, shape index: {}]   ;;  %s964_s1 = inlined_call_operand.hbm [shape: f32[8,16,16], index: 1, kind: output, shape index: {}]  }
   0x1   :  { %8 = vsyncpa [#allocation3 + $0x1], 0 }
   0x2   :  { %9 = vsyncpa [#allocation4], 0 }
   0x3   :  { %11 = vsyncpa [#allocation4 + $0x1], 0  ;;  %s728_s6 = smov 0   ;;  %s730_s7 = smov 0  }
   0x4   :  { %s732_s8 = smov 0   ;;  %s734_s9 = smov 0  }
   0x5 LB: > { %s749_s10 = sadd.s32 4294967295, %s703_s9   ;;  %s534_s11 = sadd.s32 4294967294, %s703_s9   ;;  %s703_s9 = sphi %s734_s9, %s978_s9   ;;  %s699_s8 = sphi %s732_s8, %s977_s8   ;;  %s695_s7 = sphi %s730_s7, %s976_s7   ;;  %s691_s6 = sphi %s728_s6, %s975_s6  }
   0x6   : > { %s753_s12 = sadd.s32 1, %s703_s9   ;;  %s24_s13 = sadd.s32 1, %s699_s8 }
   0x7   : > { %s21_s14 = ssub.s32 %s703_s9, %s753_s12  ;;  %p31_p0 = scmp.ne.s32.totalorder %s699_s8, %s695_s7 }
   0x8   : > { %p22_p1 = scmp.eq.s32.totalorder %s21_s14, 0  ;;  %p32_p2 = scmp.eq.s32.totalorder %s703_s9, 0 }
   0x9   : > { %p37_p3 = scmp.ne.s32.totalorder %s695_s7, %s691_s6  ;;  %p38_p4 = scmp.eq.s32.totalorder %s749_s10, 0 }
   0xa   : > { %s765_s15 = scalar_select %p22_p1, %s699_s8, %s24_s13  }
   0xb   : > { %p767_p5 = por %p32_p2, %p31_p0  ;;  %p771_p6 = por %p38_p4, %p37_p3 }
   0xc   : > { %p61_p7 = scmp.eq.s32.totalorder %s749_s10, 3  ;;  %p67_p8 = scmp.eq.s32.totalorder %s534_s11, 3 }
   0xd   : > { %s968_s17 = scalar_select %p771_p6, 1, 0 }
   0xe   : > { %p566_p9 = scmp.lt.s32.totalorder %s703_s9, 4  ;;  %p777_p10 = por %p61_p7, %p31_p0 }
   0xf   : > { %p781_p11 = por %p67_p8, %p37_p3  ;;  %s87_s20 = sand.u32 1, %s699_s8  }
  0x10   : > { %s969_s18 = scalar_select %p777_p10, 1, 0 }
  0x11   : > { %s970_s19 = scalar_select %p781_p11, 1, 0 }
  0x12   : > { %s551_s21 = sshll.u32 %s703_s9, 9  ;;  %s537_s22 = sshll.u32 %s87_s20, 5 }
  0x13   : > { %s790_s25 = scalar_lea.hbm %s963_s0, %s551_s21  ;;  %s91_s26 = scalar_lea.vmem [#allocation2], %s537_s22 }
  0x14   : > { %s99_s27 = sshll.u32 %s91_s26, 4  ;;  %p794_p12 = pnand %p566_p9, %p767_p5  ;;  %s798_s27 = int_to_ptr.vmem [resolvable:$true] %s99_s27 }
  0x15   : > { %s800_s29 = scalar_lea.sflag [#allocation3], %s87_s20  ;;  %s611_s30 = scalar_lea.hbm %s790_s25, 512 }
  0x16   : > { %p612_p13 = scmp.ne.s32.totalorder %s790_s25, %s611_s30  ;;  %p613_p0 = pneg %p794_p12 }
  0x17   : > { %s616_s4 = scalar_lea.hbm %s963_s0, 2048  ;;  %p617_p3 = scmp.lt.s32.totalorder %s790_s25, %s963_s0 }
  0x18   : > { %p614_p1 = pnand %p613_p0, %p612_p13  ;;  %p618_p4 = scmp.lt.s32.totalorder %s616_s4, %s611_s30 }
  0x1a   : > { %p615_p2 = pneg %p614_p1  ;;  %p619_p5 = por %p618_p4, %p617_p3 }
  0x1c   : > { %p620_p7 = pnand %p619_p5, %p615_p2 }
  0x1e   : > { %623 = shalt.err (!%p620_p7)
}
  0x1f   : > { %s624_s13 = scalar_lea.vmem %s798_s27, 512  ;;  %s705_s14 = smov [#allocation2]  }
  0x20   : > { %p625_p8 = scmp.ne.s32.totalorder %s798_s27, %s624_s13  ;;  %s629_s16 = sshll.u32 %s705_s14, 4  ;;  %s630_s16 = int_to_ptr.vmem [resolvable:$false] %s629_s16 }
  0x21   : > { %s631_s20 = scalar_lea.vmem %s630_s16, 1024  ;;  %p632_p1 = scmp.lt.s32.totalorder %s798_s27, %s630_s16 }
  0x22   : > { %p627_p9 = pnand %p625_p8, %p613_p0  ;;  %p633_p11 = scmp.lt.s32.totalorder %s631_s20, %s624_s13 }
  0x24   : > { %p628_p13 = pneg %p627_p9  ;;  %p634_p10 = por %p633_p11, %p632_p1 }
  0x26   : > { %p635_p6 = pnand %p634_p10, %p628_p13 }
  0x28   : > { %638 = shalt.err (!%p635_p6)
}
  0x29   : > { %s706_s21 = smov 128   ;;  %s707_s22 = smov 8  }
  0x2a   : > { %561 = dma.hbm_to_vmem [thread:$0]  (!%p794_p12), %s790_s25, 512, %s798_s27, %s800_s29, %s706_s21, %s706_s21, %s707_s22  }
  0x2b   : > { %p541_p0 = scmp.ge.s32.totalorder %s703_s9, 1  ;;  %p107_p2 = scmp.lt.s32.totalorder %s703_s9, 5 }
  0x2d   : > { %p108_p3 = pnand %p541_p0, %p107_p2 }
  0x2e   : > { %s824_s23 = sand.u32 (!%p108_p3), 1, %s695_s7   ;;  %p972_p6 = scmp.ne.s32.totalorder (!%p108_p3), %s968_s17, 0 }
  0x2f   : > { %111 = sbr.rel (%p108_p3) target bundleno = 379 (0x17b), region = 24  ;;  %s542_s24 = sshll.u32 (!%p108_p3), %s824_s23, 5 }
  0x30   : > { %s114_s26 = scalar_lea.sflag (!%p108_p3), [#allocation3], %s824_s23  ;;  %s117_s30 = scalar_lea.vmem (!%p108_p3), [#allocation2], %s542_s24 }
  0x34   : > { %682 = dma.done.wait (%p972_p6), %s114_s26, 512  }
  0x35   : > { %684 = vsyncadd (%p972_p6), %s114_s26, 4294966784  ;;  %vm150_vm0 = vcmask 1041408   ;;  %vm171_vm1 = vcmask 1040384   ;;  %v140_v0 = vld [vmem:[%s117_s30 + $0x10] sm:$0xff]  ;;  %v141_v1 = vld [vmem:[%s117_s30 + $0x18] sm:$0xff]  ;;  %vm197_vm2 = vcmask 1046528  }
  0x36   : > { %vm220_vm3 = vcmask 1045504   ;;  %vm239_vm4 = vcmask 1044480   ;;  %v138_v2 = vld [vmem:[%s117_s30] sm:$0xff]  ;;  %v145_v3 = vrot.slane %v140_v0, 2  ;;  %v154_v4 = vrot.slane %v140_v0, 6  ;;  %v834_v6 = vld [vmem:[%s117_s30 + $0x8] sm:$0xff] }
  0x37   : > { %v155_v5 = vrot.slane %v141_v1, 6  ;;  %v144_v7 = vrot.slane %v138_v2, 2  ;;  %vm266_vm5 = vcmask 1043456   ;;  %v151_v8 = vrot.slane %v138_v2, 6  ;;  %s708_s17 = smov 126   ;;  %s709_s25 = smov 2  }
  0x38   : > { %v152_v9 = vrot.slane %v834_v6, 6  ;;  %v164_v10 = vrot.slane %v141_v1, 4  ;;  %vm178_vm6 = vcmask 1042432   ;;  %v173_v12 = vsel %vm171_vm1, %v145_v3, %v140_v0  ;;  %s710_s27 = smov 4   ;;  %s711_s28 = smov 6  }
  0x39   : > { %v156_v11 = vsel %vm150_vm0, %v154_v4, %v155_v5  ;;  %v172_v13 = vsel %vm171_vm1, %v144_v7, %v138_v2  ;;  %v168_v14 = vrot.slane %v141_v1, 2  ;;  %v175_v15 = vsel %vm150_vm0, %v173_v12, %v154_v4  ;;  %s712_s29 = smov 127   ;;  %s713_s2 = smov 125  }
  0x3a   : > { %v841_v16 = vmul.f32 0.0, %v156_v11  ;;  %v843_v17 = vmul.f32 1.776635e-17, %v156_v11  ;;  %v227_v18 = vrot.slane %v156_v11, 2  ;;  %v188_v19 = vmul.f32 1.776635e-17, %v175_v15 }
  0x3b   : > { %v226_v20 = vrot.slane %v175_v15, 2  ;;  %v846_v21 = vsel %vm150_vm0, %v151_v8, %v152_v9  ;;  %v163_v22 = vrot.slane %v834_v6, 4  ;;  %v183_v23 = vmul.f32 0.0, %v175_v15  ;;  %s714_s3 = smov 124   ;;  %s135_s4 = scalar_lea.vmem [#allocation5], %s542_s24 }
  0x3c   : > { %v204_v24 = vrot.slane %v843_v17, 1  ;;  %v246_v25 = vrot.slane %v843_v17, 3  ;;  %v174_v26 = vsel %vm150_vm0, %v172_v13, %v151_v8  ;;  %v203_v27 = vrot.slane %v188_v19, 1  ;;  %s461_s5 = sshll.u32 %s135_s4, 4  ;;  %s553_s11 = sshll.u32 %s749_s10, 9  ;;  %s913_s5 = int_to_ptr.vmem [resolvable:$true] %s461_s5 }
  0x3d   : > { %v228_v28 = vsel %vm220_vm3, %v226_v20, %v227_v18  ;;  %v245_v29 = vrot.slane %v188_v19, 3  ;;  %v273_v30 = vrot.slane %v841_v16, 4  ;;  %v272_v31 = vrot.slane %v183_v23, 4  ;;  %s920_s16 = scalar_lea.hbm %s964_s1, %s553_s11  ;;  %s447_s10 = scalar_lea.sflag [#allocation4], %s824_s23 }
  0x3e   : > { %v182_v32 = vmul.f32 0.0, %v846_v21  ;;  %v185_v33 = vmul.f32 1.776635e-17, %v174_v26  ;;  %v186_v34 = vmul.f32 1.776635e-17, %v846_v21  ;;  %v205_v35 = vsel %vm197_vm2, %v203_v27, %v204_v24  ;;  %s639_s20 = scalar_lea.vmem %s913_s5, 512 }
  0x3f   : > { %v247_v36 = vsel %vm239_vm4, %v245_v29, %v246_v25  ;;  %v181_v37 = vmul.f32 0.0, %v174_v26  ;;  %v221_v38 = vrot.slane %v174_v26, 2  ;;  %v214_v39 = vadd.f32 %v205_v35, %v183_v23  ;;  %p640_p10 = scmp.ne.s32.totalorder %s913_s5, %s639_s20  ;;  %p973_p11 = scmp.ne.s32.totalorder %s969_s18, 0 }
  0x40   : > { %v198_v40 = vrot.slane %v185_v33, 1  ;;  %v199_v41 = vrot.slane %v186_v34, 1  ;;  %v222_v42 = vrot.slane %v846_v21, 2  ;;  %v240_v43 = vrot.slane %v185_v33, 3  ;;  %s715_s21 = smov [#allocation5]  }
  0x41   : > { %v241_v44 = vrot.slane %v186_v34, 3  ;;  %v267_v45 = vrot.slane %v181_v37, 4  ;;  %v268_v46 = vrot.slane %v182_v32, 4  ;;  %v237_v47 = vadd.f32 %v228_v28, %v214_v39  ;;  %p641_p12 = pnand %p640_p10, %p973_p11  ;;  %s643_s22 = sshll.u32 %s715_s21, 4  ;;  %s644_s22 = int_to_ptr.vmem [resolvable:$false] %s643_s22 }
  0x42   : > { %v200_v48 = vsel %vm197_vm2, %v198_v40, %v199_v41  ;;  %v223_v49 = vsel %vm220_vm3, %v221_v38, %v222_v42  ;;  %v177_v50 = vsel %vm150_vm0, %v155_v5, %v164_v10  ;;  %v274_v51 = vsel %vm266_vm5, %v272_v31, %v273_v30  ;;  %s645_s24 = scalar_lea.vmem %s644_s22, 1024  ;;  %p646_p5 = scmp.lt.s32.totalorder %s913_s5, %s644_s22 }
  0x43   : > { %v212_v52 = vadd.f32 %v200_v48, %v181_v37  ;;  %v242_v53 = vsel %vm239_vm4, %v240_v43, %v241_v44  ;;  %v180_v54 = vsel %vm178_vm6, %v177_v50, %v168_v14  ;;  %v256_v55 = vadd.f32 %v247_v36, %v237_v47  ;;  %p642_p4 = pneg %p641_p12  ;;  %p647_p7 = scmp.lt.s32.totalorder %s645_s24, %s639_s20 }
  0x44   : > { %v190_v56 = vmul.f32 1.776635e-17, %v180_v54  ;;  %v229_v57 = vrot.slane %v180_v54, 2  ;;  %v259_v58 = vmul.f32 0.0, %v180_v54  ;;  %v167_v60 = vrot.slane %v834_v6, 2 }
  0x45   : > { %v235_v59 = vadd.f32 %v223_v49, %v212_v52  ;;  %v176_v61 = vsel %vm150_vm0, %v152_v9, %v163_v22  ;;  %v867_v62 = vadd.f32 %v274_v51, %v256_v55  ;;  %v269_v63 = vsel %vm266_vm5, %v267_v45, %v268_v46  ;;  %p648_p8 = por %p647_p7, %p646_p5 }
  0x46   : > { %v206_v0 = vrot.slane %v190_v56, 1  ;;  %v248_v1 = vrot.slane %v190_v56, 3  ;;  %v230_v3 = vsel %vm220_vm3, %v227_v18, %v229_v57  ;;  %v179_v4 = vsel %vm178_vm6, %v176_v61, %v167_v60 }
  0x47   : > { %v254_v2 = vadd.f32 %v242_v53, %v235_v59  ;;  %293 = vrot.lane.b32.xlu1 %v867_v62, %s708_s17  ;;  %v275_v6 = vrot.slane %v259_v58, 4  ;;  %v187_v7 = vmul.f32 1.776635e-17, %v179_v4  ;;  %v224_v8 = vrot.slane %v179_v4, 2  ;;  %p649_p9 = pnand %p648_p8, %p642_p4 }
  0x48   : > { %v207_v5 = vsel %vm197_vm2, %v204_v24, %v206_v0  ;;  %v258_v11 = vmul.f32 0.0, %v179_v4  ;;  %v249_v12 = vsel %vm239_vm4, %v246_v25, %v248_v1  ;;  %vm342_vm7 = vcmask 15360  }
  0x49   : > { %v281_v9 = vadd.f32 %v269_v63, %v254_v2  ;;  %v215_v10 = vadd.f32 %v207_v5, %v841_v16  ;;  %v201_v13 = vrot.slane %v187_v7, 1  ;;  %v243_v14 = vrot.slane %v187_v7, 3 }
  0x4a   : > { %v276_v17 = vsel %vm266_vm5, %v273_v30, %v275_v6  ;;  %v225_v19 = vsel %vm220_vm3, %v222_v42, %v224_v8  ;;  %v270_v20 = vrot.slane %v258_v11, 4  ;;  %vm337_vm8 = vcmask 7168  }
  0x4b   : > { %289 = vrot.lane.b32.xlu0 %v281_v9, %s708_s17  ;;  %v238_v15 = vadd.f32 %v230_v3, %v215_v10  ;;  %v202_v18 = vsel %vm197_vm2, %v199_v41, %v201_v13  ;;  %v244_v23 = vsel %vm239_vm4, %v241_v44, %v243_v14  ;;  %vm347_vm9 = vcmask 146432  }
  0x4c   : > { %v213_v22 = vadd.f32 %v202_v18, %v182_v32  ;;  %v271_v25 = vsel %vm266_vm5, %v268_v46, %v270_v20  ;;  %vm352_vm10 = vcmask 154624   ;;  %vm441_vm11 = vcmask 130048  }
  0x4d   : > { %v257_v21 = vadd.f32 %v249_v12, %v238_v15 }
  0x4e   : > { %v236_v24 = vadd.f32 %v225_v19, %v213_v22 }
  0x4f   : > { %v284_v16 = vadd.f32 %v276_v17, %v257_v21 }
  0x50   : > { %v255_v26 = vadd.f32 %v244_v23, %v236_v24 }
  0x51   : > { %295 = vrot.lane.b32.xlu1 %v284_v16, %s708_s17 }
  0x52   : > { %v282_v27 = vadd.f32 %v271_v25, %v255_v26 }
  0x54   : > { %291 = vrot.lane.b32.xlu0 %v282_v27, %s708_s17 }
  0x55   : > { %303 = vrot.lane.b32.xlu1 %v282_v27, %s709_s25 }
  0x58   : > { %301 = vrot.lane.b32.xlu0 %v281_v9, %s709_s25 }
  0x59   : > { %307 = vrot.lane.b32.xlu1 %v284_v16, %s709_s25 }
  0x5c   : > { %305 = vrot.lane.b32.xlu0 %v867_v62, %s709_s25 }
  0x5d   : > { %315 = vrot.lane.b32.xlu1 %v282_v27, %s710_s27 }
  0x60   : > { %313 = vrot.lane.b32.xlu0 %v281_v9, %s710_s27 }
  0x61   : > { %319 = vrot.lane.b32.xlu1 %v284_v16, %s710_s27 }
  0x64   : > { %317 = vrot.lane.b32.xlu0 %v867_v62, %s710_s27 }
  0x65   : > { %327 = vrot.lane.b32.xlu1 %v282_v27, %s711_s28 }
  0x68   : > { %325 = vrot.lane.b32.xlu0 %v281_v9, %s711_s28 }
  0x69   : > { %331 = vrot.lane.b32.xlu1 %v284_v16, %s711_s28 }
  0x6c   : > { %329 = vrot.lane.b32.xlu0 %v867_v62, %s711_s28 }
  0xb9   : > { %v294_v28 = vpop.permute.xlu1 %293 }
  0xba   : > { %v340_v55 = vsel %vm337_vm8, %v294_v28, %v867_v62 }
  0xbd   : > { %v290_v29 = vpop.permute.xlu0 %289 }
  0xbe   : > { %v338_v45 = vsel %vm337_vm8, %v290_v29, %v281_v9 }
  0xc3   : > { %v296_v30 = vpop.permute.xlu1 %295 }
  0xc4   : > { %v341_v46 = vsel %vm337_vm8, %v296_v30, %v284_v16 }
  0xc6   : > { %v292_v31 = vpop.permute.xlu0 %291 }
  0xc7   : > { %v304_v32 = vpop.permute.xlu1 %303  ;;  %v339_v39 = vsel %vm337_vm8, %v292_v31, %v282_v27 }
  0xc8   : > { %v344_v40 = vsel %vm342_vm7, %v339_v39, %v304_v32 }
  0xca   : > { %v302_v33 = vpop.permute.xlu0 %301 }
  0xcb   : > { %v308_v34 = vpop.permute.xlu1 %307  ;;  %v343_v47 = vsel %vm342_vm7, %v338_v45, %v302_v33 }
  0xcc   : > { %v346_v48 = vsel %vm342_vm7, %v341_v46, %v308_v34 }
  0xce   : > { %v306_v35 = vpop.permute.xlu0 %305 }
  0xcf   : > { %v316_v36 = vpop.permute.xlu1 %315  ;;  %v345_v56 = vsel %vm342_vm7, %v340_v55, %v306_v35 }
  0xd0   : > { %v349_v41 = vsel %vm347_vm9, %v344_v40, %v316_v36 }
  0xd2   : > { %v314_v37 = vpop.permute.xlu0 %313 }
  0xd3   : > { %v320_v38 = vpop.permute.xlu1 %319  ;;  %v348_v49 = vsel %vm347_vm9, %v343_v47, %v314_v37 }
  0xd4   : > { %v351_v50 = vsel %vm347_vm9, %v346_v48, %v320_v38 }
  0xd6   : > { %v318_v42 = vpop.permute.xlu0 %317 }
  0xd7   : > { %v328_v43 = vpop.permute.xlu1 %327  ;;  %v350_v57 = vsel %vm347_vm9, %v345_v56, %v318_v42 }
  0xd8   : > { %v354_v44 = vsel %vm352_vm10, %v349_v41, %v328_v43 }
  0xd9   : > { %391 = vrot.lane.b32.xlu1 %v354_v44, %s708_s17  ;;  %v362_v59 = vmul.f32 1.776635e-17, %v354_v44  ;;  %v358_v0 = vmul.f32 0.0, %v354_v44 }
  0xda   : > { %v326_v51 = vpop.permute.xlu0 %325 }
  0xdb   : > { %v332_v52 = vpop.permute.xlu1 %331  ;;  %v353_v53 = vsel %vm352_vm10, %v348_v49, %v326_v51 }
  0xdc   : > { %v356_v54 = vsel %vm352_vm10, %v351_v50, %v332_v52  ;;  %389 = vrot.lane.b32.xlu0 %v353_v53, %s708_s17  ;;  %v361_v61 = vmul.f32 1.776635e-17, %v353_v53  ;;  %v357_v1 = vmul.f32 0.0, %v353_v53 }
  0xdd   : > { %395 = vrot.lane.b32.xlu1 %v356_v54, %s708_s17  ;;  %v364_v63 = vmul.f32 1.776635e-17, %v356_v54  ;;  %v360_v2 = vmul.f32 0.0, %v356_v54 }
  0xde   : > { %v330_v58 = vpop.permute.xlu0 %329 }
  0xdf   : > { %v355_v60 = vsel %vm352_vm10, %v350_v57, %v330_v58 }
  0xe0   : > { %393 = vrot.lane.b32.xlu0 %v355_v60, %s708_s17  ;;  %v363_v62 = vmul.f32 1.776635e-17, %v355_v60  ;;  %v359_v3 = vmul.f32 0.0, %v355_v60 }
  0xe1   : > { %371 = vrot.lane.b32.xlu1 %v362_v59, %s712_s29 }
  0xe4   : > { %369 = vrot.lane.b32.xlu0 %v361_v61, %s712_s29 }
  0xe5   : > { %375 = vrot.lane.b32.xlu1 %v364_v63, %s712_s29 }
  0xe8   : > { %373 = vrot.lane.b32.xlu0 %v363_v62, %s712_s29 }
  0xe9   : > { %407 = vrot.lane.b32.xlu1 %v362_v59, %s713_s2 }
  0xec   : > { %405 = vrot.lane.b32.xlu0 %v361_v61, %s713_s2 }
  0xed   : > { %411 = vrot.lane.b32.xlu1 %v364_v63, %s713_s2 }
  0xf0   : > { %409 = vrot.lane.b32.xlu0 %v363_v62, %s713_s2 }
  0xf1   : > { %427 = vrot.lane.b32.xlu1 %v358_v0, %s714_s3 }
  0xf4   : > { %425 = vrot.lane.b32.xlu0 %v357_v1, %s714_s3 }
  0xf5   : > { %431 = vrot.lane.b32.xlu1 %v360_v2, %s714_s3 }
  0xf8   : > { %429 = vrot.lane.b32.xlu0 %v359_v3, %s714_s3 }
 0x14b   : > { %v392_v4 = vpop.permute.xlu1 %391 }
 0x14e   : > { %v390_v5 = vpop.permute.xlu0 %389 }
 0x14f   : > { %v396_v6 = vpop.permute.xlu1 %395 }
 0x152   : > { %v394_v7 = vpop.permute.xlu0 %393 }
 0x153   : > { %v372_v8 = vpop.permute.xlu1 %371 }
 0x154   : > { %v382_v13 = vadd.f32 %v372_v8, %v358_v0 }
 0x156   : > { %v370_v9 = vpop.permute.xlu0 %369  ;;  %v402_v19 = vadd.f32 %v392_v4, %v382_v13 }
 0x157   : > { %v376_v10 = vpop.permute.xlu1 %375  ;;  %v381_v17 = vadd.f32 %v370_v9, %v357_v1 }
 0x158   : > { %v384_v18 = vadd.f32 %v376_v10, %v360_v2 }
 0x159   : > { %v401_v16 = vadd.f32 %v390_v5, %v381_v17 }
 0x15a   : > { %v374_v11 = vpop.permute.xlu0 %373  ;;  %v404_v24 = vadd.f32 %v396_v6, %v384_v18 }
 0x15b   : > { %v408_v12 = vpop.permute.xlu1 %407  ;;  %v383_v23 = vadd.f32 %v374_v11, %v359_v3 }
 0x15c   : > { %v418_v20 = vadd.f32 %v408_v12, %v402_v19 }
 0x15d   : > { %v403_v30 = vadd.f32 %v394_v7, %v383_v23 }
 0x15e   : > { %v406_v14 = vpop.permute.xlu0 %405 }
 0x15f   : > { %v412_v15 = vpop.permute.xlu1 %411  ;;  %v417_v26 = vadd.f32 %v406_v14, %v401_v16 }
 0x160   : > { %v420_v27 = vadd.f32 %v412_v15, %v404_v24 }
 0x162   : > { %v410_v21 = vpop.permute.xlu0 %409 }
 0x163   : > { %v428_v22 = vpop.permute.xlu1 %427  ;;  %v419_v33 = vadd.f32 %v410_v21, %v403_v30 }
 0x164   : > { %v438_v25 = vadd.f32 %v428_v22, %v418_v20 }
 0x166   : > { %443 = vst.msk [vmem:[%s135_s4 + $0x8] sm:$0xff] %vm441_vm11, %v438_v25  ;;  %v426_v28 = vpop.permute.xlu0 %425 }
 0x167   : > { %v432_v29 = vpop.permute.xlu1 %431  ;;  %v437_v31 = vadd.f32 %v426_v28, %v417_v26 }
 0x168   : > { %v440_v32 = vadd.f32 %v432_v29, %v420_v27 }
 0x169   : > { %442 = vst.msk [vmem:[%s135_s4] sm:$0xff] %vm441_vm11, %v437_v31 }
 0x16a   : > { %445 = vst.msk [vmem:[%s135_s4 + $0x18] sm:$0xff] %vm441_vm11, %v440_v32  ;;  %v430_v34 = vpop.permute.xlu0 %429 }
 0x16b   : > { %v439_v35 = vadd.f32 %v430_v34, %v419_v33 }
 0x16d   : > { %444 = vst.msk [vmem:[%s135_s4 + $0x10] sm:$0xff] %vm441_vm11, %v439_v35 }
 0x16e   : > { %652 = shalt.err (!%p649_p9)
}
 0x16f   : > { %s653_s26 = scalar_lea.hbm %s920_s16, 512  ;;  %s657_s25 = scalar_lea.hbm %s964_s1, 2048 }
 0x170   : > { %p654_p13 = scmp.ne.s32.totalorder %s920_s16, %s653_s26  ;;  %p658_p2 = scmp.lt.s32.totalorder %s920_s16, %s964_s1 }
 0x171   : > { %p659_p3 = scmp.lt.s32.totalorder %s657_s25, %s653_s26 }
 0x172   : > { %p655_p1 = pnand %p654_p13, %p973_p11 }
 0x173   : > { %p660_p6 = por %p659_p3, %p658_p2 }
 0x174   : > { %p656_p0 = pneg %p655_p1 }
 0x176   : > { %p661_p10 = pnand %p660_p6, %p656_p0 }
 0x178   : > { %664 = shalt.err (!%p661_p10)
}
 0x179   : > { %s716_s29 = smov 128   ;;  %s717_s2 = smov 8  }
 0x17a   : > { %556 = dma.vmem_to_hbm [thread:$0]  (%p973_p11), %s913_s5, 512, %s920_s16, %s447_s10, %s716_s29, %s716_s29, %s717_s2  }
 0x17b PF: > { %p567_p12 = scmp.ge.s32.totalorder %s703_s9, 2  ;;  %s476_s3 = sand.u32 1, %s691_s6  }
 0x17c   : > { %p974_p4 = scmp.ne.s32.totalorder %s970_s19, 0  ;;  %s477_s4 = scalar_lea.sflag [#allocation4], %s476_s3 }
 0x17e   : > { %p563_p5 = pnand %p567_p12, %p974_p4 }
 0x180   : > { %p564_p7 = pneg %p563_p5 }
 0x182   : > { %686 = dma.done.wait (%p564_p7), %s477_s4, 512  }
 0x183   : > { %688 = vsyncadd (%p564_p7), %s477_s4, 4294966784  ;;  %p14_p8 = scmp.ge.s32.totalorder %s753_s12, 6   ;;  %s975_s6 = smov %s695_s7 }
 0x184   : > { %s976_s7 = smov %s699_s8  ;;  %s977_s8 = smov %s765_s15 }
 0x185   : > { %s978_s9 = smov %s753_s12  ;;  %16 = sbr.rel (!%p14_p8) target bundleno = 5 (0x5), region = 69 }
 0x18a   :  { %482 = vsyncpa [#allocation3], 1 }
 0x18b   :  { %484 = vsyncpa [#allocation3 + $0x1], 1 }
 0x18c   :  { %485 = vsyncpa [#allocation4], 1 }
 0x18d   :  { %487 = vsyncpa [#allocation4 + $0x1], 1 }

</bundles_post_ra>
